<compile_context>
chip_gen: v7x
topology: tpu7x:2x2x1
jax: 0.10.0
libtpu: 0.0.40
codegen_flags: <defaults>
</compile_context>

<pallas_src>
import jax
import jax.numpy as jnp
import numpy as np
from jax.experimental import pallas as pl
from jax.experimental.pallas import tpu as pltpu


def _round_up(x, m):
    return (x + m - 1) // m * m


def _pick_tb(B, S, D, npad, *, min_steps=8, vmem_budget=24 << 20):
    """Batch tile size.

    Keeps the batch grid at >= min_steps steps when possible (>= 4 steps per v7x
    TensorCore, and a deep enough pipeline on single-TC v5e/v6e that input
    prefetch, compute and writeback overlap), and keeps the double-buffered
    per-step working set (bf16 enc in + bf16 slab out + h2t) under vmem_budget,
    which is sized for v7x's 64 MiB physical VMEM with headroom.
    """
    per_row = 2 * (S * D * 2 + S * npad * 2 + S * 2)   # double-buffered bytes / batch row
    cap = max(min(B // min_steps, vmem_budget // max(per_row, 1)), 1)
    cap = int(min(cap, B))
    for tb in range(cap, 0, -1):
        if B % tb == 0:
            return tb
    return 1


def casrel_head_kernel(enc_ref, h2t_ref, w_ref, b_ref, out_ref):
    """Fused CasRel head.

    Block shapes:
      enc_ref : (TB, S, D)     encoded text tile                    (MXU dtype, bf16)
      h2t_ref : (TB, 1, S)     subject-span indicator / sub_len     (MXU dtype, bf16)
      w_ref   : (D, Npad)      [w_sh | w_st | w_oh | w_ot | 0-pad]  (MXU dtype, bf16)
      b_ref   : (1, 1, Npad)   fused bias (padded cols = -30)       (f32)
      out_ref : (TB, S, Npad)  sigmoid(logits) lane-dense slab      (bf16)
    """
    enc = enc_ref[...]                                   # (TB, S, D)
    w = w_ref[...]                                       # (D, Npad)
    h2t = h2t_ref[...]                                   # (TB, 1, S), already / sub_len

    # --- one fused MXU matmul for all four heads' logits (contract D directly,
    #     no reshape -> no VMEM relayout copy) ---
    y = jax.lax.dot_general(
        enc, w, (((2,), (0,)), ((), ())),
        preferred_element_type=jnp.float32)              # (TB, S, Npad)

    # --- subject pooling on the (otherwise idle) MXU ---
    # sub[b, 0, :] = sum_s (h2t[b, s] / sub_len[b]) * enc[b, s, :]
    # NOTE: like the PyTorch reference, no guard for sub_len == 0.
    sub = jax.lax.dot_general(
        h2t, enc, (((2,), (1,)), ((0,), (0,))),
        preferred_element_type=jnp.float32)              # (TB, 1, D)

    # Rank-1 correction from the subject-pooled vector: only the obj-head /
    # obj-tail columns (>= 2) see `encoded_text + sub`; the sub-head / sub-tail
    # columns use the raw encoding, so mask the correction there.
    corr = jax.lax.dot_general(
        sub.astype(w.dtype), w, (((2,), (0,)), ((), ())),
        preferred_element_type=jnp.float32)              # (TB, 1, Npad)
    col = jax.lax.broadcasted_iota(jnp.int32, (1, 1, out_ref.shape[-1]), 2)
    corr = jnp.where(col >= 2, corr, 0.0)

    out_ref[...] = jax.nn.sigmoid(y + corr + b_ref[...]).astype(out_ref.dtype)


def casrel_heads_pallas(encoded_text, sub_head2tail, sub_len, params,
                        *, mxu_dtype=jnp.bfloat16, out_dtype=jnp.bfloat16):
    """CasRel head math (everything after the BERT encoder) as one Pallas kernel.

    Returns the lane-dense [B, S, Npad] probability slab (columns:
    0=sub_heads, 1=sub_tails, 2..2+R=obj_heads, 2+R..2+2R=obj_tails, rest ~0).
    """
    B, S, D = encoded_text.shape
    R = params["w_oh_t"].shape[1]
    n_cols = 2 + 2 * R
    npad = _round_up(n_cols, 128)      # lane-dense output; keep at 128 (mem-bound)
    TB = _pick_tb(B, S, D, npad)

    # Fused weight [D, Npad] = [w_sh^T | w_st^T | w_oh^T | w_ot^T | zeros].
    w_all = jnp.zeros((D, npad), jnp.float32)
    w_all = w_all.at[:, 0:1].set(params["w_sh"].T)
    w_all = w_all.at[:, 1:2].set(params["w_st"].T)
    w_all = w_all.at[:, 2:2 + R].set(params["w_oh_t"])
    w_all = w_all.at[:, 2 + R:n_cols].set(params["w_ot_t"])
    # Fused bias; padded columns get a large negative bias so they decode to ~0
    # instead of sigmoid(0) = 0.5.
    b_all = jnp.full((1, 1, npad), -30.0, jnp.float32)
    b_all = b_all.at[0, 0, 0].set(params["b_sh"][0, 0])
    b_all = b_all.at[0, 0, 1].set(params["b_st"][0, 0])
    b_all = b_all.at[0, 0, 2:2 + R].set(params["b_oh"][0])
    b_all = b_all.at[0, 0, 2 + R:n_cols].set(params["b_ot"][0])

    enc = encoded_text.astype(mxu_dtype)          # bf16 halves the dominant HBM read
    w_all = w_all.astype(mxu_dtype)
    # Pre-scale the span indicator by 1/sub_len in the wrapper (plain XLA): removes
    # one kernel input, one lane-sparse DMA and the per-step divide.
    h2t = (sub_head2tail.astype(jnp.float32)
           / sub_len.reshape(B, 1).astype(jnp.float32))
    h2t = h2t.reshape(B, 1, S).astype(mxu_dtype)

    in_specs = [
        pl.BlockSpec((TB, S, D), lambda b: (b, 0, 0)),       # encoded_text
        pl.BlockSpec((TB, 1, S), lambda b: (b, 0, 0)),       # scaled sub_head2tail
        pl.BlockSpec((D, npad), lambda b: (0, 0)),           # fused weights
        pl.BlockSpec((1, 1, npad), lambda b: (0, 0, 0)),     # fused bias
    ]
    out_specs = pl.BlockSpec((TB, S, npad), lambda b: (b, 0, 0))
    out_shape = jax.ShapeDtypeStruct((B, S, npad), out_dtype)

    fn = pl.pallas_call(
        casrel_head_kernel,
        grid_spec=pltpu.PrefetchScalarGridSpec(
            num_scalar_prefetch=0,
            grid=(B // TB,),
            in_specs=in_specs,
            out_specs=out_specs,
        ),
        out_shape=out_shape,
        compiler_params=pltpu.CompilerParams(
            dimension_semantics=("parallel",),
            vmem_limit_bytes=48 << 20,   # above v5e's 16 MiB default; < v7x physical
        ),
    )
    slab = fn(enc, h2t, w_all, b_all)
    return slab, R


def casrel_forward(input_ids, mask, sub_head2tail, sub_len, params,
                   *, mxu_dtype=jnp.bfloat16):
    """Full CasRel.forward. Encoder stand-in (embedding lookup) is plain-JAX glue.

    The slab slicing below runs inside the same jit as the pallas_call; loss /
    decode code that is also jitted with this function should ideally consume the
    slab columns directly to avoid re-materializing four separate HBM arrays.
    """
    # get_encoded_text: stand-in for pretrained BERT (see TODO above).
    encoded_text = params["emb_table"][input_ids].astype(jnp.float32)   # [B, S, D]

    slab, R = casrel_heads_pallas(encoded_text, sub_head2tail, sub_len,
                                  params, mxu_dtype=mxu_dtype)
    return {
        "pred_sub_heads": slab[..., 0:1],
        "pred_sub_tails": slab[..., 1:2],
        "pred_obj_heads": slab[..., 2:2 + R],
        "pred_obj_tails": slab[..., 2 + R:2 + 2 * R],
        "mask": mask,
    }


def casrel_forward_ref(input_ids, mask, sub_head2tail, sub_len, params):
    """Pure-JAX f32 reference mirroring the PyTorch module."""
    enc = params["emb_table"][input_ids].astype(jnp.float32)            # [B, S, D]
    sh = jax.nn.sigmoid(enc @ params["w_sh"].T + params["b_sh"][0, 0])  # [B, S, 1]
    st = jax.nn.sigmoid(enc @ params["w_st"].T + params["b_st"][0, 0])
    h2t = sub_head2tail[:, None, :].astype(jnp.float32)                 # [B, 1, S]
    sub = jnp.matmul(h2t, enc)                                          # [B, 1, D]
    sub = sub / sub_len[:, :, None].astype(jnp.float32)                 # sub_len: [B,1]
    enc2 = enc + sub
    oh = jax.nn.sigmoid(enc2 @ params["w_oh_t"] + params["b_oh"])
    ot = jax.nn.sigmoid(enc2 @ params["w_ot_t"] + params["b_ot"])
    return sh, st, oh, ot


def make_params(key, vocab, D, R):
    ks = jax.random.split(key, 9)
    scale = 0.1
    return {
        "emb_table": scale * jax.random.normal(ks[0], (vocab, D), jnp.float32),
        # torch Linear(D, 1): weight [1, D], bias [1]  (bias stored as (1,1))
        "w_sh": scale * jax.random.normal(ks[1], (1, D), jnp.float32),
        "b_sh": scale * jax.random.normal(ks[2], (1, 1), jnp.float32),
        "w_st": scale * jax.random.normal(ks[3], (1, D), jnp.float32),
        "b_st": scale * jax.random.normal(ks[4], (1, 1), jnp.float32),
        # torch Linear(D, R): weight [R, D] -> stored pre-transposed [D, R]
        "w_oh_t": scale * jax.random.normal(ks[5], (D, R), jnp.float32),
        "b_oh": scale * jax.random.normal(ks[6], (1, R), jnp.float32),
        "w_ot_t": scale * jax.random.normal(ks[7], (D, R), jnp.float32),
        "b_ot": scale * jax.random.normal(ks[8], (1, R), jnp.float32),
    }


def _f32(x):
    return np.asarray(jnp.asarray(x, jnp.float32))


def _check(out, ref, tol):
    # Tolerance covers bf16 MXU operands, the bf16 output slab (probability
    # quantization ~4e-3) and the algebraic refactor enc@W + sub@W vs (enc+sub)@W.
    np.testing.assert_allclose(_f32(out["pred_sub_heads"]), _f32(ref[0]), rtol=tol, atol=tol)
    np.testing.assert_allclose(_f32(out["pred_sub_tails"]), _f32(ref[1]), rtol=tol, atol=tol)
    np.testing.assert_allclose(_f32(out["pred_obj_heads"]), _f32(ref[2]), rtol=tol, atol=tol)
    np.testing.assert_allclose(_f32(out["pred_obj_tails"]), _f32(ref[3]), rtol=tol, atol=tol)


if __name__ == "__main__":
    key = jax.random.PRNGKey(0)
    k_par, k_ids, k_ids2 = jax.random.split(key, 3)

    # --- small config: B=2, S=8, D=32, R=18 ---
    B, S, D, R, vocab = 2, 8, 32, 18, 50
    params = make_params(k_par, vocab, D, R)
    input_ids = jax.random.randint(k_ids, (B, S), 0, vocab)
    mask = jnp.ones((B, S), jnp.float32)

    # subject span markers: batch0 -> tokens 1..3, batch1 -> tokens 2..5
    sub_head2tail = jnp.zeros((B, S), jnp.float32)
    sub_head2tail = sub_head2tail.at[0, 1:4].set(1.0).at[1, 2:6].set(1.0)
    sub_len = jnp.sum(sub_head2tail, axis=-1, keepdims=True)            # [B, 1]

    fwd = jax.jit(casrel_forward)
    out = fwd(input_ids, mask, sub_head2tail, sub_len, params)
    jax.block_until_ready(out)
    ref = casrel_forward_ref(input_ids, mask, sub_head2tail, sub_len, params)
    _check(out, ref, tol=1e-2)

    # --- second config exercises a deeper batch grid (B=8 -> TB=1, grid=8) ---
    B2 = 8
    input_ids2 = jax.random.randint(k_ids2, (B2, S), 0, vocab)
    mask2 = jnp.ones((B2, S), jnp.float32)
    sub_h2t2 = jnp.zeros((B2, S), jnp.float32)
    for b in range(B2):
        sub_h2t2 = sub_h2t2.at[b, (b % 4):(b % 4) + 2].set(1.0)
    sub_len2 = jnp.sum(sub_h2t2, axis=-1, keepdims=True)

    out2 = fwd(input_ids2, mask2, sub_h2t2, sub_len2, params)
    jax.block_until_ready(out2)
    ref2 = casrel_forward_ref(input_ids2, mask2, sub_h2t2, sub_len2, params)
    _check(out2, ref2, tol=1e-2)

    print("KERNEL_OK")
</pallas_src>

<mosaic_0001>
module attributes {stable_mosaic.version = 11 : i64} {
  func.func @casrel_head_kernel(%arg0: i32, %arg1: memref<1x8x32xbf16, #tpu.memory_space<vmem>>, %arg2: memref<1x1x8xbf16, #tpu.memory_space<vmem>>, %arg3: memref<32x128xbf16, #tpu.memory_space<vmem>>, %arg4: memref<1x1x128xf32, #tpu.memory_space<vmem>>, %arg5: memref<1x8x128xbf16, #tpu.memory_space<vmem>>) attributes {dimension_semantics = [#tpu.dimension_semantics<parallel>], iteration_bounds = array<i64: 2>, scalar_prefetch = 0 : i64, scratch_operands = 0 : i64, tpu.core_type = #tpu.core_type<tc>, window_params = [{transform_indices = @transform_0, window_bounds = array<i64: 1, 8, 32>}, {transform_indices = @transform_1, window_bounds = array<i64: 1, 1, 8>}, {pipeline_mode = #tpu.pipeline_mode<synchronous>, transform_indices = @transform_2, window_bounds = array<i64: 32, 128>}, {pipeline_mode = #tpu.pipeline_mode<synchronous>, transform_indices = @transform_3, window_bounds = array<i64: 1, 1, 128>}, {transform_indices = @transform_4, window_bounds = array<i64: 1, 8, 128>}]} {
    %c0 = arith.constant 0 : index
    %c0_0 = arith.constant 0 : index
    %c0_1 = arith.constant 0 : index
    %0 = vector.load %arg1[%c0, %c0_0, %c0_1] : memref<1x8x32xbf16, #tpu.memory_space<vmem>>, vector<1x8x32xbf16>
    %c0_2 = arith.constant 0 : index
    %c0_3 = arith.constant 0 : index
    %1 = vector.load %arg3[%c0_2, %c0_3] : memref<32x128xbf16, #tpu.memory_space<vmem>>, vector<32x128xbf16>
    %c0_4 = arith.constant 0 : index
    %c0_5 = arith.constant 0 : index
    %c0_6 = arith.constant 0 : index
    %2 = vector.load %arg2[%c0_4, %c0_5, %c0_6] : memref<1x1x8xbf16, #tpu.memory_space<vmem>>, vector<1x1x8xbf16>
    %cst = arith.constant dense<0.000000e+00> : vector<1x8x128xf32>
    %3 = tpu.matmul %0, %1, %cst {dimension_numbers = #tpu.dot_dimension_numbers<[2], [0], [0, 1], [1], [0, 0, 0, 1, 1, 1], [], []>} : vector<1x8x32xbf16>, vector<32x128xbf16>, vector<1x8x128xf32> -> vector<1x8x128xf32>
    %cst_7 = arith.constant dense<0.000000e+00> : vector<1x1x32xf32>
    %4 = tpu.matmul %2, %0, %cst_7 {dimension_numbers = #tpu.dot_dimension_numbers<[2], [1], [1], [2], [0, 0, 0, 1, 1, 2], [0], [0]>} : vector<1x1x8xbf16>, vector<1x8x32xbf16>, vector<1x1x32xf32> -> vector<1x1x32xf32>
    %5 = arith.truncf %4 : vector<1x1x32xf32> to vector<1x1x32xbf16>
    %cst_8 = arith.constant dense<0.000000e+00> : vector<1x1x128xf32>
    %6 = tpu.matmul %5, %1, %cst_8 {dimension_numbers = #tpu.dot_dimension_numbers<[2], [0], [0, 1], [1], [0, 0, 0, 1, 1, 1], [], []>} : vector<1x1x32xbf16>, vector<32x128xbf16>, vector<1x1x128xf32> -> vector<1x1x128xf32>
    %7 = tpu.iota {dimensions = array<i32: 2>} : vector<1x1x128xi32>
    %c2_i32 = arith.constant 2 : i32
    %8 = vector.broadcast %c2_i32 : i32 to vector<1x1x128xi32>
    %9 = arith.cmpi sge, %7, %8 : vector<1x1x128xi32>
    %cst_9 = arith.constant 0.000000e+00 : f32
    %10 = vector.broadcast %cst_9 : f32 to vector<1x1x128xf32>
    %11 = arith.select %9, %6, %10 : vector<1x1x128xi1>, vector<1x1x128xf32>
    %12 = vector.broadcast %11 : vector<1x1x128xf32> to vector<1x8x128xf32>
    %13 = arith.addf %3, %12 : vector<1x8x128xf32>
    %c0_10 = arith.constant 0 : index
    %c0_11 = arith.constant 0 : index
    %c0_12 = arith.constant 0 : index
    %14 = vector.load %arg4[%c0_10, %c0_11, %c0_12] : memref<1x1x128xf32, #tpu.memory_space<vmem>>, vector<1x1x128xf32>
    %15 = vector.broadcast %14 : vector<1x1x128xf32> to vector<1x8x128xf32>
    %16 = arith.addf %13, %15 : vector<1x8x128xf32>
    %17 = arith.negf %16 : vector<1x8x128xf32>
    %18 = math.exp %17 : vector<1x8x128xf32>
    %cst_13 = arith.constant 1.000000e+00 : f32
    %19 = vector.broadcast %cst_13 : f32 to vector<1x8x128xf32>
    %20 = arith.addf %19, %18 : vector<1x8x128xf32>
    %21 = arith.divf %19, %20 : vector<1x8x128xf32>
    %22 = arith.truncf %21 : vector<1x8x128xf32> to vector<1x8x128xbf16>
    %c0_14 = arith.constant 0 : index
    %c0_15 = arith.constant 0 : index
    %c0_16 = arith.constant 0 : index
    %23 = vector.load %arg5[%c0_14, %c0_15, %c0_16] : memref<1x8x128xbf16, #tpu.memory_space<vmem>>, vector<1x8x128xbf16>
    tpu.vector_store %arg5[%c0_14, %c0_15, %c0_16], %22 {strides = array<i32>} : memref<1x8x128xbf16, #tpu.memory_space<vmem>>, vector<1x8x128xbf16>,
    return
  }
  func.func @transform_0(%arg0: i32) -> (i32, i32, i32) {
    %c0_i32 = arith.constant 0 : i32
    %c0_i32_0 = arith.constant 0 : i32
    %c0_i32_1 = arith.constant 0 : i32
    return %arg0, %c0_i32, %c0_i32_0 : i32, i32, i32
  }
  func.func @transform_1(%arg0: i32) -> (i32, i32, i32) {
    %c0_i32 = arith.constant 0 : i32
    %c0_i32_0 = arith.constant 0 : i32
    %c0_i32_1 = arith.constant 0 : i32
    return %arg0, %c0_i32, %c0_i32_0 : i32, i32, i32
  }
  func.func @transform_2(%arg0: i32) -> (i32, i32) {
    %c0_i32 = arith.constant 0 : i32
    %c0_i32_0 = arith.constant 0 : i32
    %c0_i32_1 = arith.constant 0 : i32
    return %c0_i32, %c0_i32_0 : i32, i32
  }
  func.func @transform_3(%arg0: i32) -> (i32, i32, i32) {
    %c0_i32 = arith.constant 0 : i32
    %c0_i32_0 = arith.constant 0 : i32
    %c0_i32_1 = arith.constant 0 : i32
    %c0_i32_2 = arith.constant 0 : i32
    return %c0_i32, %c0_i32_0, %c0_i32_1 : i32, i32, i32
  }
  func.func @transform_4(%arg0: i32) -> (i32, i32, i32) {
    %c0_i32 = arith.constant 0 : i32
    %c0_i32_0 = arith.constant 0 : i32
    %c0_i32_1 = arith.constant 0 : i32
    return %arg0, %c0_i32, %c0_i32_0 : i32, i32, i32
  }
}

</mosaic_0001>

<bundles_post_ra>
// kernel: casrel_forward.1
= control target key start
LH: loop header
LB: loop body
LE: loop exit
PB: predicated region body
PF: predicated region fallthrough
CT: control target
= control target key end

     0   :  { %s544_s15 = smov 0   ;;  %s584_s0 = inlined_call_operand.vmem [shape: bf16[2,8,32], index: 0, kind: input, shape index: {}]   ;;  %s585_s1 = inlined_call_operand.vmem [shape: bf16[2,1,8], index: 1, kind: input, shape index: {}]   ;;  %s586_s2 = inlined_call_operand.vmem [shape: bf16[32,128], index: 2, kind: input, shape index: {}]   ;;  %s587_s3 = inlined_call_operand.vmem [shape: f32[1,1,128], index: 3, kind: input, shape index: {}]   ;;  %s588_s4 = inlined_call_operand.vmem [shape: bf16[2,8,128], index: 4, kind: output, shape index: {}]  }
   0x1 LB: > { %s447_s16 = sadd.s32 4294967295, %s515_s15   ;;  %p451_p0 = scmp.ge.s32.totalorder %s515_s15, 1  ;;  %s515_s15 = sphi %s544_s15, %s14_s15  }
   0x2   : > { %p169_p1 = scmp.lt.s32.totalorder %s515_s15, 3 }
   0x4   : > { %p170_p2 = pnand %p451_p0, %p169_p1 }
   0x5   : > { %p196_p3 = scmp.lt.s32.totalorder (!%p170_p2), %s447_s16, 1  ;;  %v503_v0 = vld [vmem:[%s586_s2] sm:$0xff] (!%p170_p2)   ;;  %v517_v1 = vmov (!%p170_p2), 0.0   ;;  %vm518_vm0 = vmmov (!%p170_p2), 0   ;;  %vm218_vm1 = vcmask (!%p170_p2), 1043456   ;;  %vm214_vm2 = vcmask (!%p170_p2), 64512  }
   0x6   : > { %173 = sbr.rel (%p170_p2) target bundleno = 483 (0x1e3), region = 36  ;;  %471 = vmatprep.subr.bf16.mxu0 (!%p170_p2), %v517_v1  ;;  %473 = vmatprep.mubr.msk.bf16.mxu0 (!%p170_p2), %vm518_vm0, %v517_v1  ;;  %v504_v5 = vld [vmem:[%s586_s2 + $0x8] sm:$0xff] (!%p170_p2)   ;;  %vm275_vm3 = vcmask (!%p170_p2), 261120   ;;  %v319_v15 = vlaneseq (!%p170_p2)  ;;  %v459_v24 = vld [vmem:[%s587_s3] ss:$0 sm:$0xff] (!%p170_p2) }
   0x7   : > { %477 = vmatprep.subr.bf16.mxu1 (!%p170_p2), %v517_v1  ;;  %481 = vmatprep.mubr.msk.bf16.mxu1 (!%p170_p2), %vm518_vm0, %v517_v1 }
   0x8   : > { %478 = vmatpush3.bf16.msra.mxu1 (!%p170_p2), %v503_v0  ;;  %v320_v16 = vand.u32 (!%p170_p2), 127, %v319_v15  ;;  %v324_v17 = vshrl.u32 (!%p170_p2), %v319_v15, 7 }
   0x9   : > { %479 = vmatprep.subr.bf16.mxu1 (!%p170_p2), %v517_v1 }
   0xa   : > { %vm321_vm4 = vcmp.ge.s32.totalorder (!%p170_p2), %v320_v16, 2  ;;  %v325_v18 = vsub.s32 (!%p170_p2), 0, %v324_v17 }
   0xc   : > { %480 = vmatpush3.bf16.msra.mxu1 (!%p170_p2), %v504_v5 }
   0xd   : > { %s590_s16 = smov (!%p196_p3, %s447_s16), 1 }
   0xe   : > { %s452_s19 = sshll.u32 %s590_s16, 2  ;;  %s202_s25 = scalar_lea.vmem %s585_s1, %s590_s16 }
   0xf   : > { %s199_s22 = scalar_lea.vmem %s584_s0, %s452_s19  ;;  %v213_v4 = vld [vmem:[%s202_s25] sm:$0x1]  ;;  %s206_s6 = scalar_lea.vmem %s588_s4, %s452_s19 }
  0x10   : > { %v208_v2 = vld [vmem:[%s199_s22] sm:$0xf] }
  0x11   : > { %v220_v3 = vsel %vm218_vm1, %v208_v2, 0 }
  0x12   : > { %472 = vmatpush3.bf16.msra.mxu0 %v220_v3 }
  0x13   : > { %485 = vmatprep.subr.bf16.mxu0 %v517_v1 }
  0x15   : > { %474 = vmatmul.mubr.msk.bf16.vlgmr.msra.gmra.mrb[0].mxu0 %vm214_vm2, %v213_v4 }
  0x16   : > { %486 = vmatpush3.bf16.msra.mxu0 %v503_v0  ;;  %489 = vmatprep.mubr.msk.bf16.mxu0 %vm518_vm0, %v517_v1 }
  0x17   : > { %487 = vmatprep.subr.bf16.mxu0 %v517_v1 }
  0x1a   : > { %488 = vmatpush3.bf16.msra.mxu0 %v504_v5 }
  0x1d   : > { %490 = vmatmul.mubr.msk.bf16.vlgmr.msra.gmra.mrb[4].mxu0 %vm275_vm3, %v208_v2 }
  0xe8   : > { %v256_v6 = vpop.f32.mrb[0].mxu0 }
  0xe9   : > { %v262_v7 = vpack.c.bf16 %v256_v6, %v256_v6  ;;  %v475_v8 = vpop.f32.mrb[1].mxu0 }
  0xea   : > { %v259_v9 = vpop.f32.mrb[2].mxu0 }
  0xeb   : > { %v476_v10 = vpop.f32.mrb[3].mxu0  ;;  %482 = vmatmul.mubr.msk.bf16.vlgmr.msra.gmra.mrb[0].mxu1 %vm275_vm3, %v262_v7 }
  0xf0   : > { %v363_v11 = vpop.f32.mrb[4].mxu0 }
  0xf1   : > { %v491_v12 = vpop.f32.mrb[5].mxu0 }
  0xf2   : > { %v366_v13 = vpop.f32.mrb[6].mxu0 }
  0xf3   : > { %v492_v14 = vpop.f32.mrb[7].mxu0 }
 0x1be   : > { %v313_v19 = vpop.f32.mrb[0].mxu1 }
 0x1bf   : > { %v322_v20 = vsel %vm321_vm4, %v313_v19, 0.0  ;;  %v483_v21 = vpop.f32.mrb[1].mxu1 }
 0x1c0   : > { %v326_v22 = vrot.slane %v322_v20, %v325_v18  ;;  %v316_v23 = vpop.f32.mrb[2].mxu1 }
 0x1c1   : > { %v484_v25 = vpop.f32.mrb[3].mxu1 }
 0x1c2   : > { %v364_v26 = vadd.f32 %v363_v11, %v326_v22 }
 0x1c4   : > { %v376_v27 = vadd.f32 %v459_v24, %v364_v26 }
 0x1c6   : > { %v460_v28 = vmul.f32 -1.442695, %v376_v27 }
 0x1c8   : > { %505 = vpow2.f32 %v460_v28 }
 0x1d2   : > { %v506_v29 = vpop.eup %505 }
 0x1d3   : > { %v380_v30 = vadd.f32 1.0, %v506_v29 }
 0x1d5   : > { %507 = vrcp.f32 %v380_v30 }
 0x1df   : > { %v508_v31 = vpop.eup %507 }
 0x1e0   : > { %v383_v32 = vpack.c.bf16 %v508_v31, %v508_v31 }
 0x1e2   : > { %384 = vst [vmem:[%s206_s6] sm:$0xf] %v383_v32 }
 0x1e3 PF: > { %s14_s15 = sadd.s32 1, %s515_s15  }
 0x1e4   : > { %p11_p4 = scmp.ge.s32.totalorder %s14_s15, 4  }
 0x1e6   :  { %13 = sbr.rel (!%p11_p4) target bundleno = 1 (0x1), region = 69 }

</bundles_post_ra>
